<compile_context>
chip_gen: v5e
topology: v5e:2x2
jax: 0.10.0
libtpu: 0.0.40
codegen_flags: <defaults>
</compile_context>

<pallas_src>
import functools

import jax
import jax.numpy as jnp
from jax import lax
from jax.experimental import pallas as pl
from jax.experimental.pallas import tpu as pltpu

HIDDEN = 20            # hidden width of the torch module
D_SLAB = 8             # rows of the HBM activation slabs (data rows + bias)
BIAS_IN_ROW = D_SLAB - 1   # row 7 of the input slab carries the constant 1.0
HP = 24                # padded hidden width: 20 hidden + bias row -> 24
BIAS_ROW = HP - 1      # row 23 of hidden activations carries the constant 1.0
N_LAYERS = 5
SAT = 30.0             # tanh(30) == 1.0 in f32 -> bias row self-propagates


def _odefunc_mlp_kernel(x_ref, w_ref, o_ref):
    """Whole MLP hot path on one activation tile.

    x_ref : (D_SLAB, tn)   transposed activations; rows 0..D-1 = data,
                           row BIAS_IN_ROW == 1.0, remaining rows == 0
    w_ref : (5, HP, HP)    packed augmented weights (biases folded into the
                           bias column; SAT entries keep the bias row at 1.0)
    o_ref : (D_SLAB, tn)   rows 0..D-1 hold the result, rest zeros
    """
    tn = x_ref.shape[1]
    # Rebuild the padded hidden-width activation: rows 0..7 come from the
    # 8-row input slab, rows 8..HP-1 are zero.
    h = jnp.concatenate(
        [x_ref[...], jnp.zeros((HP - D_SLAB, tn), jnp.float32)], axis=0)

    for l in range(N_LAYERS - 1):          # 4 hidden layers with tanh
        # Bias row: pre-activation is SAT (=30) by construction, so tanh
        # saturates to 1.0f and the bias path propagates with zero extra ops.
        h = jnp.tanh(jnp.dot(w_ref[l], h, preferred_element_type=jnp.float32))

    # Final linear layer: only the first D_SLAB output rows are meaningful,
    # so compute and store just those (4x fewer vst / output DMA bytes).
    o_ref[...] = jnp.dot(w_ref[N_LAYERS - 1, :D_SLAB, :], h,
                         preferred_element_type=jnp.float32)


def _round_up(a, m):
    return ((a + m - 1) // m) * m


def pack_odefunc_params(params):
    """Pack the 5 (weight, bias) pairs into one (5, HP, HP) augmented buffer.

    Call this ONCE per parameter set (it is hoisted out of the per-call
    forward path).  params store weights as (in, out); the kernel needs
    (out, in) since it computes h_next = W @ h on transposed activations.

    Layer 0's bias column is BIAS_IN_ROW (the input slab's constant-1 row);
    layers 1..4 use BIAS_ROW.  Hidden layers additionally get a SAT entry so
    the bias row's pre-activation is 30 and tanh keeps it at exactly 1.0f.
    """
    w_packed = jnp.zeros((N_LAYERS, HP, HP), jnp.float32)
    for i in range(1, N_LAYERS + 1):
        w = params[f"w{i}"].astype(jnp.float32)               # (in, out)
        b = params[f"b{i}"].reshape(-1).astype(jnp.float32)   # (out,)
        in_dim, out_dim = w.shape
        l = i - 1
        bias_col = BIAS_IN_ROW if l == 0 else BIAS_ROW
        if l == 0:
            assert in_dim <= D_SLAB - 1, "input_dim must be <= 7"
        w_packed = w_packed.at[l, :out_dim, :in_dim].set(w.T)
        w_packed = w_packed.at[l, :out_dim, bias_col].set(b)
        if l < N_LAYERS - 1:
            w_packed = w_packed.at[l, BIAS_ROW, bias_col].set(SAT)
    return w_packed


@functools.partial(jax.jit, static_argnames=("block_n",))
def odefunc_forward(t, x, w_packed, block_n=2048):
    """Pallas version of ODEFunc.forward(t, x).  `t` is ignored (as in torch).

    x: (N, 1, D) float   -> returns (N, 1, D) in x.dtype
    w_packed: (5, HP, HP) float32 from pack_odefunc_params(params)

    NOTE: for ODE-solver loops that call forward many times, carry the
    transposed/padded (D_SLAB, n_pad) layout across calls instead of paying
    the reshape/transpose/pad below on every call.
    """
    del t
    assert block_n % 128 == 0, "block_n must be a multiple of 128 (lane tile)"
    n, dammy, d = x.shape
    assert d <= D_SLAB - 1, "input_dim must be <= 7 (row 7 is the bias row)"
    nb = n * dammy

    # Batch lives in the lane axis.  Pick the tile so large batches get at
    # least 2 grid steps (v7x megacore), capped at block_n.
    tn = min(block_n, max(128, _round_up(pl.cdiv(nb, 2), 128)))
    n_pad = _round_up(nb, tn)
    grid = (n_pad // tn,)

    xt = x.reshape(nb, d).T.astype(jnp.float32)           # (D, nb)
    x_aug = jnp.zeros((D_SLAB, n_pad), jnp.float32)
    x_aug = x_aug.at[:d, :nb].set(xt)
    x_aug = x_aug.at[BIAS_IN_ROW, :].set(1.0)             # constant bias row

    out_t = pl.pallas_call(
        _odefunc_mlp_kernel,
        out_shape=jax.ShapeDtypeStruct((D_SLAB, n_pad), jnp.float32),
        grid=grid,
        in_specs=[
            # lane-dense activation tile, tiled along the batch (lane) axis
            pl.BlockSpec((D_SLAB, tn), lambda i: (0, i)),
            # single packed weight buffer; constant index_map => fetched once
            # and kept resident across grid steps
            pl.BlockSpec((N_LAYERS, HP, HP), lambda i: (0, 0, 0)),
        ],
        out_specs=pl.BlockSpec((D_SLAB, tn), lambda i: (0, i)),
        compiler_params=pltpu.CompilerParams(
            dimension_semantics=("parallel",)),
    )(x_aug, w_packed)

    y = out_t[:d, :nb].T.reshape(n, dammy, d)
    return y.astype(x.dtype)


def init_odefunc_params(key, input_dim):
    """Deterministic synthetic parameters with the same shapes as the torch
    module (weights stored transposed: (in, out))."""
    dims = [(input_dim, HIDDEN), (HIDDEN, HIDDEN), (HIDDEN, HIDDEN),
            (HIDDEN, HIDDEN), (HIDDEN, input_dim)]
    params = {}
    for idx, (fan_in, fan_out) in enumerate(dims, start=1):
        key, kw, kb = jax.random.split(key, 3)
        bound = 1.0 / jnp.sqrt(fan_in)   # matches nn.Linear default init range
        params[f"w{idx}"] = jax.random.uniform(
            kw, (fan_in, fan_out), jnp.float32, -bound, bound)
        params[f"b{idx}"] = jax.random.uniform(
            kb, (1, fan_out), jnp.float32, -bound, bound)
    # Extra parameters of the torch module (unused by forward):
    params["sigma"] = jnp.array([0.1], jnp.float32)
    params["a"] = jnp.ones((input_dim,), jnp.float32) * 0.1
    return params


def odefunc_forward_ref(x, params):
    """Plain-JAX reference (full-precision matmuls) for the correctness check."""
    n, dammy, d = x.shape
    h = x.reshape(n * dammy, d).astype(jnp.float32)
    for i in range(1, N_LAYERS):
        h = jnp.tanh(jnp.dot(h, params[f"w{i}"],
                             precision=lax.Precision.HIGHEST) + params[f"b{i}"])
    h = jnp.dot(h, params["w5"], precision=lax.Precision.HIGHEST) + params["b5"]
    return h.reshape(n, dammy, d)


if __name__ == "__main__":
    key = jax.random.PRNGKey(0)
    input_dim = 4
    batch = 300           # non-multiple of the tile: exercises padding path

    k_params, k_x = jax.random.split(key)
    params = init_odefunc_params(k_params, input_dim)
    x = jax.random.normal(k_x, (batch, 1, input_dim), jnp.float32)
    t = jnp.zeros(())     # unused, mirrors forward(t, x) signature

    # Pack parameters ONCE (hoisted out of the per-call forward path).
    w_packed = jax.block_until_ready(pack_odefunc_params(params))

    out = odefunc_forward(t, x, w_packed)
    out = jax.block_until_ready(out)

    ref = odefunc_forward_ref(x, params)
    assert out.shape == x.shape
    # Tolerance leaves headroom for the MXU's multi-pass f32 matmul path while
    # still catching any structural bug (those would be >= 1e-2).
    assert jnp.allclose(out, ref, atol=1e-3, rtol=1e-3), "mismatch vs reference"

    print("KERNEL_OK")
</pallas_src>

<mosaic_0001>
module attributes {stable_mosaic.version = 11 : i64} {
  func.func @_odefunc_mlp_kernel(%arg0: i32, %arg1: memref<8x256xf32, #tpu.memory_space<vmem>>, %arg2: memref<5x24x24xf32, #tpu.memory_space<vmem>>, %arg3: memref<8x256xf32, #tpu.memory_space<vmem>>) attributes {dimension_semantics = [#tpu.dimension_semantics<parallel>], iteration_bounds = array<i64: 2>, scalar_prefetch = 0 : i64, scratch_operands = 0 : i64, tpu.core_type = #tpu.core_type<tc>, window_params = [{transform_indices = @transform_0, window_bounds = array<i64: 8, 256>}, {pipeline_mode = #tpu.pipeline_mode<synchronous>, transform_indices = @transform_1, window_bounds = array<i64: 5, 24, 24>}, {transform_indices = @transform_2, window_bounds = array<i64: 8, 256>}]} {
    %c0 = arith.constant 0 : index
    %c0_0 = arith.constant 0 : index
    %0 = vector.load %arg1[%c0, %c0_0] : memref<8x256xf32, #tpu.memory_space<vmem>>, vector<8x256xf32>
    %cst = arith.constant 0.000000e+00 : f32
    %1 = vector.broadcast %cst : f32 to vector<16x256xf32>
    %2 = tpu.concatenate %0, %1 in 0 : vector<8x256xf32>, vector<16x256xf32> -> vector<24x256xf32>
    %c0_1 = arith.constant 0 : index
    %c0_2 = arith.constant 0 : index
    %c0_3 = arith.constant 0 : index
    %3 = vector.load %arg2[%c0_1, %c0_2, %c0_3] : memref<5x24x24xf32, #tpu.memory_space<vmem>>, vector<1x24x24xf32>
    %4 = vector.shape_cast %3 : vector<1x24x24xf32> to vector<24x24xf32>
    %cst_4 = arith.constant dense<0.000000e+00> : vector<24x256xf32>
    %5 = tpu.matmul %4, %2, %cst_4 {dimension_numbers = #tpu.dot_dimension_numbers<[1], [0], [0], [1], [0, 0, 1, 1], [], []>} : vector<24x24xf32>, vector<24x256xf32>, vector<24x256xf32> -> vector<24x256xf32>
    %6 = math.tanh %5 : vector<24x256xf32>
    %c1 = arith.constant 1 : index
    %c0_5 = arith.constant 0 : index
    %c0_6 = arith.constant 0 : index
    %7 = vector.load %arg2[%c1, %c0_5, %c0_6] : memref<5x24x24xf32, #tpu.memory_space<vmem>>, vector<1x24x24xf32>
    %8 = vector.shape_cast %7 : vector<1x24x24xf32> to vector<24x24xf32>
    %cst_7 = arith.constant dense<0.000000e+00> : vector<24x256xf32>
    %9 = tpu.matmul %8, %6, %cst_7 {dimension_numbers = #tpu.dot_dimension_numbers<[1], [0], [0], [1], [0, 0, 1, 1], [], []>} : vector<24x24xf32>, vector<24x256xf32>, vector<24x256xf32> -> vector<24x256xf32>
    %10 = math.tanh %9 : vector<24x256xf32>
    %c2 = arith.constant 2 : index
    %c0_8 = arith.constant 0 : index
    %c0_9 = arith.constant 0 : index
    %11 = vector.load %arg2[%c2, %c0_8, %c0_9] : memref<5x24x24xf32, #tpu.memory_space<vmem>>, vector<1x24x24xf32>
    %12 = vector.shape_cast %11 : vector<1x24x24xf32> to vector<24x24xf32>
    %cst_10 = arith.constant dense<0.000000e+00> : vector<24x256xf32>
    %13 = tpu.matmul %12, %10, %cst_10 {dimension_numbers = #tpu.dot_dimension_numbers<[1], [0], [0], [1], [0, 0, 1, 1], [], []>} : vector<24x24xf32>, vector<24x256xf32>, vector<24x256xf32> -> vector<24x256xf32>
    %14 = math.tanh %13 : vector<24x256xf32>
    %c3 = arith.constant 3 : index
    %c0_11 = arith.constant 0 : index
    %c0_12 = arith.constant 0 : index
    %15 = vector.load %arg2[%c3, %c0_11, %c0_12] : memref<5x24x24xf32, #tpu.memory_space<vmem>>, vector<1x24x24xf32>
    %16 = vector.shape_cast %15 : vector<1x24x24xf32> to vector<24x24xf32>
    %cst_13 = arith.constant dense<0.000000e+00> : vector<24x256xf32>
    %17 = tpu.matmul %16, %14, %cst_13 {dimension_numbers = #tpu.dot_dimension_numbers<[1], [0], [0], [1], [0, 0, 1, 1], [], []>} : vector<24x24xf32>, vector<24x256xf32>, vector<24x256xf32> -> vector<24x256xf32>
    %18 = math.tanh %17 : vector<24x256xf32>
    %c4 = arith.constant 4 : index
    %c0_14 = arith.constant 0 : index
    %c0_15 = arith.constant 0 : index
    %19 = vector.load %arg2[%c4, %c0_14, %c0_15] : memref<5x24x24xf32, #tpu.memory_space<vmem>>, vector<1x8x24xf32>
    %20 = vector.shape_cast %19 : vector<1x8x24xf32> to vector<8x24xf32>
    %cst_16 = arith.constant dense<0.000000e+00> : vector<8x256xf32>
    %21 = tpu.matmul %20, %18, %cst_16 {dimension_numbers = #tpu.dot_dimension_numbers<[1], [0], [0], [1], [0, 0, 1, 1], [], []>} : vector<8x24xf32>, vector<24x256xf32>, vector<8x256xf32> -> vector<8x256xf32>
    %c0_17 = arith.constant 0 : index
    %c0_18 = arith.constant 0 : index
    %22 = vector.load %arg3[%c0_17, %c0_18] : memref<8x256xf32, #tpu.memory_space<vmem>>, vector<8x256xf32>
    tpu.vector_store %arg3[%c0_17, %c0_18], %21 {strides = array<i32>} : memref<8x256xf32, #tpu.memory_space<vmem>>, vector<8x256xf32>,
    return
  }
  func.func @transform_0(%arg0: i32) -> (i32, i32) {
    %c0_i32 = arith.constant 0 : i32
    %c0_i32_0 = arith.constant 0 : i32
    return %c0_i32, %arg0 : i32, i32
  }
  func.func @transform_1(%arg0: i32) -> (i32, i32, i32) {
    %c0_i32 = arith.constant 0 : i32
    %c0_i32_0 = arith.constant 0 : i32
    %c0_i32_1 = arith.constant 0 : i32
    %c0_i32_2 = arith.constant 0 : i32
    return %c0_i32, %c0_i32_0, %c0_i32_1 : i32, i32, i32
  }
  func.func @transform_2(%arg0: i32) -> (i32, i32) {
    %c0_i32 = arith.constant 0 : i32
    %c0_i32_0 = arith.constant 0 : i32
    return %c0_i32, %arg0 : i32, i32
  }
}

</mosaic_0001>

<bundles_post_ra>
// kernel: odefunc_forward.1
= control target key start
LH: loop header
LB: loop body
LE: loop exit
PB: predicated region body
PF: predicated region fallthrough
CT: control target
= control target key end

     0   :  { %7 = vsyncpa [#allocation3], 0  ;;  %s733_s9 = smov 0   ;;  %s786_s0 = inlined_call_operand.vmem [shape: f32[8,512], index: 0, kind: input, shape index: {}]   ;;  %s787_s1 = inlined_call_operand.hbm [shape: f32[5,24,24], index: 1, kind: input, shape index: {}]   ;;  %s788_s2 = inlined_call_operand.vmem [shape: f32[8,512], index: 2, kind: output, shape index: {}]  }
   0x1 LB: > { %s102_s12 = sshll.u32 %s787_s1, 4  ;;  %s565_s13 = sadd.s32 4294967295, %s713_s9   ;;  %s713_s9 = sphi %s733_s9, %s13_s9   ;;  %s103_s12 = int_to_ptr.hbm [resolvable:$true] %s102_s12 }
   0x2   : > { %p567_p0 = scmp.ge.s32.totalorder %s713_s9, 1  ;;  %p91_p1 = scmp.lt.s32.totalorder %s713_s9, 3 }
   0x3   : > { %p612_p2 = scmp.eq.s32.totalorder %s565_s13, 0  ;;  %s715_s14 = smov [#allocation2]  }
   0x4   : > { %p92_p3 = pnand %p567_p0, %p91_p1  ;;  %s104_s15 = sshll.u32 %s715_s14, 4  ;;  %s105_s15 = int_to_ptr.vmem [resolvable:$true] %s104_s15 }
   0x5   : > { %s716_s16 = smov 128   ;;  %s717_s17 = smov 8  }
   0x6   : > { %p608_p4 = pneg %p92_p3  ;;  %129 = sbr.rel (%p92_p3) target bundleno = 776 (0x308), region = 28 }
   0x8   : > { %p609_p5 = pnand %p612_p2, %p608_p4 }
   0xa   : > { %611 = dma.hbm_to_vmem [thread:$0]  (!%p609_p5), %s103_s12, 1920, %s105_s15, [#allocation3], %s716_s16, %s716_s16, %s717_s17  }
   0xb   : > { %708 = dma.done.wait (%p612_p2), [#allocation3], 1920  }
   0xc   : > { %710 = vsyncadd (%p612_p2), [#allocation3], 4294965376  ;;  %s572_s18 = sshll.u32 %s565_s13, 1  ;;  %vm169_vm0 = vcmask 195584   ;;  %v166_v2 = vld [vmem:[#allocation2] sm:$0xff]  ;;  %v167_v3 = vld [vmem:[#allocation2 + $0x8] sm:$0xff] }
   0xd   : > { %p153_p6 = scmp.lt.s32.totalorder %s572_s18, 3  ;;  %v168_v4 = vld [vmem:[#allocation2 + $0x10] sm:$0xff]  ;;  %v238_v15 = vld [vmem:[#allocation2 + $0x18] sm:$0xff]  ;;  %v239_v18 = vld [vmem:[#allocation2 + $0x20] sm:$0xff] }
   0xe   : > { %v240_v19 = vld [vmem:[#allocation2 + $0x28] sm:$0xff]  ;;  %v309_v30 = vld [vmem:[#allocation2 + $0x30] sm:$0xff]  ;;  %v310_v33 = vld [vmem:[#allocation2 + $0x38] sm:$0xff] }
   0xf   : > { %s790_s18 = smov (!%p153_p6, %s572_s18), 3  ;;  %v311_v34 = vld [vmem:[#allocation2 + $0x40] sm:$0xff]  ;;  %v380_v45 = vld [vmem:[#allocation2 + $0x48] sm:$0xff]  ;;  %v381_v48 = vld [vmem:[#allocation2 + $0x50] sm:$0xff] }
  0x10   : > { %s573_s19 = sshll.u32 %s790_s18, 3  ;;  %v382_v49 = vld [vmem:[#allocation2 + $0x58] sm:$0xff]  ;;  %v451_v60 = vld [vmem:[#allocation2 + $0x60] sm:$0xff] }
  0x11   : > { %s156_s22 = scalar_lea.vmem %s786_s0, %s573_s19  ;;  %s162_s25 = scalar_lea.vmem %s788_s2, %s573_s19 }
  0x12   : > { %v164_v0 = vld [vmem:[%s156_s22] sm:$0xff]  ;;  %v165_v1 = vld [vmem:[%s156_s22 + $0x8] sm:$0xff] }
  0x13   : > { %194 = vmatpush.msra.mxu0 %v164_v0  ;;  %220 = vmatpush.msra.mxu1 %v165_v1 }
  0x14   : > { %576 = vmatmul.msk.f32.vlgmr.msra.gmra.mxu0 %vm169_vm0, %v166_v2  ;;  %579 = vmatmul.msk.f32.vlgmr.msra.gmra.mxu1 %vm169_vm0, %v166_v2 }
  0x1c   : > { %577 = vmatmul.msk.f32.gmra.mxu0 %vm169_vm0, %v167_v3  ;;  %580 = vmatmul.msk.f32.gmra.mxu1 %vm169_vm0, %v167_v3 }
  0x24   : > { %578 = vmatmul.msk.f32.gmra.mxu0 %vm169_vm0, %v168_v4  ;;  %581 = vmatmul.msk.f32.gmra.mxu1 %vm169_vm0, %v168_v4 }
  0x91   : > { %v196_v5 = vpop.f32.mrf.mxu0  ;;  %v222_v6 = vpop.f32.mrf.mxu1 }
  0x99   : > { %v199_v7 = vpop.f32.mrf.mxu0  ;;  %v225_v8 = vpop.f32.mrf.mxu1 }
  0xa1   : > { %v202_v9 = vpop.f32.mrf.mxu0  ;;  %v228_v10 = vpop.f32.mrf.mxu1 }
  0xa2   : > { %625 = vtanh.f32 %v202_v9 }
  0xa3   : > { %627 = vtanh.f32 %v228_v10 }
  0xa4   : > { %629 = vtanh.f32 %v199_v7 }
  0xa5   : > { %631 = vtanh.f32 %v225_v8 }
  0xa6   : > { %633 = vtanh.f32 %v196_v5 }
  0xa7   : > { %635 = vtanh.f32 %v222_v6 }
  0xa8   : > { %v626_v11 = vpop.eup %625 }
  0xa9   : > { %v628_v12 = vpop.eup %627  ;;  %263 = vmatpush.msra.mxu2 %v626_v11 }
  0xaa   : > { %v630_v13 = vpop.eup %629  ;;  %289 = vmatpush.msra.mxu3 %v628_v12 }
  0xab   : > { %v632_v14 = vpop.eup %631  ;;  %264 = vmatpush.msra.mxu2 %v630_v13 }
  0xac   : > { %v634_v16 = vpop.eup %633  ;;  %290 = vmatpush.msra.mxu3 %v632_v14 }
  0xad   : > { %v636_v17 = vpop.eup %635  ;;  %265 = vmatpush.msra.mxu2 %v634_v16 }
  0xae   : > { %291 = vmatpush.msra.mxu3 %v636_v17  ;;  %582 = vmatmul.msk.f32.vlgmr.msra.gmra.mxu2 %vm169_vm0, %v238_v15 }
  0xaf   : > { %585 = vmatmul.msk.f32.vlgmr.msra.gmra.mxu3 %vm169_vm0, %v238_v15 }
  0xb6   : > { %583 = vmatmul.msk.f32.gmra.mxu2 %vm169_vm0, %v239_v18 }
  0xb7   : > { %586 = vmatmul.msk.f32.gmra.mxu3 %vm169_vm0, %v239_v18 }
  0xbe   : > { %584 = vmatmul.msk.f32.gmra.mxu2 %vm169_vm0, %v240_v19 }
  0xbf   : > { %587 = vmatmul.msk.f32.gmra.mxu3 %vm169_vm0, %v240_v19 }
 0x131   : > { %v267_v20 = vpop.f32.mrf.mxu2 }
 0x132   : > { %v293_v21 = vpop.f32.mrf.mxu3 }
 0x139   : > { %v270_v22 = vpop.f32.mrf.mxu2 }
 0x13a   : > { %v296_v23 = vpop.f32.mrf.mxu3 }
 0x141   : > { %v273_v24 = vpop.f32.mrf.mxu2 }
 0x142   : > { %637 = vtanh.f32 %v273_v24  ;;  %v299_v25 = vpop.f32.mrf.mxu3 }
 0x143   : > { %639 = vtanh.f32 %v299_v25 }
 0x144   : > { %641 = vtanh.f32 %v270_v22 }
 0x145   : > { %643 = vtanh.f32 %v296_v23 }
 0x146   : > { %645 = vtanh.f32 %v267_v20 }
 0x147   : > { %647 = vtanh.f32 %v293_v21 }
 0x148   : > { %v638_v26 = vpop.eup %637 }
 0x149   : > { %v640_v27 = vpop.eup %639  ;;  %334 = vmatpush.msrb.mxu0 %v638_v26 }
 0x14a   : > { %v642_v28 = vpop.eup %641  ;;  %360 = vmatpush.msrb.mxu1 %v640_v27 }
 0x14b   : > { %v644_v29 = vpop.eup %643  ;;  %335 = vmatpush.msrb.mxu0 %v642_v28 }
 0x14c   : > { %v646_v31 = vpop.eup %645  ;;  %361 = vmatpush.msrb.mxu1 %v644_v29 }
 0x14d   : > { %v648_v32 = vpop.eup %647  ;;  %336 = vmatpush.msrb.mxu0 %v646_v31 }
 0x14e   : > { %362 = vmatpush.msrb.mxu1 %v648_v32  ;;  %588 = vmatmul.msk.f32.vlgmr.msrb.gmra.mxu0 %vm169_vm0, %v309_v30 }
 0x14f   : > { %591 = vmatmul.msk.f32.vlgmr.msrb.gmra.mxu1 %vm169_vm0, %v309_v30 }
 0x156   : > { %589 = vmatmul.msk.f32.gmra.mxu0 %vm169_vm0, %v310_v33 }
 0x157   : > { %592 = vmatmul.msk.f32.gmra.mxu1 %vm169_vm0, %v310_v33 }
 0x15e   : > { %590 = vmatmul.msk.f32.gmra.mxu0 %vm169_vm0, %v311_v34 }
 0x15f   : > { %593 = vmatmul.msk.f32.gmra.mxu1 %vm169_vm0, %v311_v34 }
 0x1cb   : > { %v338_v35 = vpop.f32.mrf.mxu0 }
 0x1cc   : > { %v364_v36 = vpop.f32.mrf.mxu1 }
 0x1d3   : > { %v341_v37 = vpop.f32.mrf.mxu0 }
 0x1d4   : > { %v367_v38 = vpop.f32.mrf.mxu1 }
 0x1db   : > { %v344_v39 = vpop.f32.mrf.mxu0 }
 0x1dc   : > { %649 = vtanh.f32 %v344_v39  ;;  %v370_v40 = vpop.f32.mrf.mxu1 }
 0x1dd   : > { %651 = vtanh.f32 %v370_v40 }
 0x1de   : > { %653 = vtanh.f32 %v341_v37 }
 0x1df   : > { %655 = vtanh.f32 %v367_v38 }
 0x1e0   : > { %657 = vtanh.f32 %v338_v35 }
 0x1e1   : > { %659 = vtanh.f32 %v364_v36 }
 0x1e2   : > { %v650_v41 = vpop.eup %649 }
 0x1e3   : > { %v652_v42 = vpop.eup %651  ;;  %405 = vmatpush.msrb.mxu2 %v650_v41 }
 0x1e4   : > { %v654_v43 = vpop.eup %653  ;;  %431 = vmatpush.msrb.mxu3 %v652_v42 }
 0x1e5   : > { %v656_v44 = vpop.eup %655  ;;  %406 = vmatpush.msrb.mxu2 %v654_v43 }
 0x1e6   : > { %v658_v46 = vpop.eup %657  ;;  %432 = vmatpush.msrb.mxu3 %v656_v44 }
 0x1e7   : > { %v660_v47 = vpop.eup %659  ;;  %407 = vmatpush.msrb.mxu2 %v658_v46 }
 0x1e8   : > { %433 = vmatpush.msrb.mxu3 %v660_v47  ;;  %594 = vmatmul.msk.f32.vlgmr.msrb.gmra.mxu2 %vm169_vm0, %v380_v45 }
 0x1e9   : > { %597 = vmatmul.msk.f32.vlgmr.msrb.gmra.mxu3 %vm169_vm0, %v380_v45 }
 0x1f0   : > { %595 = vmatmul.msk.f32.gmra.mxu2 %vm169_vm0, %v381_v48 }
 0x1f1   : > { %598 = vmatmul.msk.f32.gmra.mxu3 %vm169_vm0, %v381_v48 }
 0x1f8   : > { %596 = vmatmul.msk.f32.gmra.mxu2 %vm169_vm0, %v382_v49 }
 0x1f9   : > { %599 = vmatmul.msk.f32.gmra.mxu3 %vm169_vm0, %v382_v49 }
 0x26b   : > { %v409_v50 = vpop.f32.mrf.mxu2 }
 0x26c   : > { %v435_v51 = vpop.f32.mrf.mxu3 }
 0x273   : > { %v412_v52 = vpop.f32.mrf.mxu2 }
 0x274   : > { %v438_v53 = vpop.f32.mrf.mxu3 }
 0x27b   : > { %v415_v54 = vpop.f32.mrf.mxu2 }
 0x27c   : > { %661 = vtanh.f32 %v415_v54  ;;  %v441_v55 = vpop.f32.mrf.mxu3 }
 0x27d   : > { %663 = vtanh.f32 %v441_v55 }
 0x27e   : > { %665 = vtanh.f32 %v412_v52 }
 0x27f   : > { %667 = vtanh.f32 %v438_v53 }
 0x280   : > { %669 = vtanh.f32 %v409_v50 }
 0x281   : > { %671 = vtanh.f32 %v435_v51 }
 0x282   : > { %v662_v56 = vpop.eup %661 }
 0x283   : > { %v664_v57 = vpop.eup %663  ;;  %468 = vmatpush.msra.mxu0 %v662_v56 }
 0x284   : > { %v666_v58 = vpop.eup %665  ;;  %488 = vmatpush.msra.mxu1 %v664_v57 }
 0x285   : > { %v668_v59 = vpop.eup %667  ;;  %469 = vmatpush.msra.mxu0 %v666_v58 }
 0x286   : > { %v670_v61 = vpop.eup %669  ;;  %489 = vmatpush.msra.mxu1 %v668_v59 }
 0x287   : > { %v672_v62 = vpop.eup %671  ;;  %470 = vmatpush.msra.mxu0 %v670_v61 }
 0x288   : > { %490 = vmatpush.msra.mxu1 %v672_v62  ;;  %600 = vmatmul.msk.f32.vlgmr.msra.gmra.mxu0 %vm169_vm0, %v451_v60 }
 0x289   : > { %601 = vmatmul.msk.f32.vlgmr.msra.gmra.mxu1 %vm169_vm0, %v451_v60 }
 0x305   : > { %v472_v63 = vpop.f32.mrf.mxu0 }
 0x306   : > { %495 = vst [vmem:[%s162_s25] sm:$0xff] %v472_v63  ;;  %v492_v0 = vpop.f32.mrf.mxu1 }
 0x307   : > { %496 = vst [vmem:[%s162_s25 + $0x8] sm:$0xff] %v492_v0 }
 0x308 PF: > { %s13_s9 = sadd.s32 1, %s713_s9  }
 0x309   : > { %p10_p7 = scmp.ge.s32.totalorder %s13_s9, 4  }
 0x30b   :  { %12 = sbr.rel (!%p10_p7) target bundleno = 1 (0x1), region = 67 }
 0x310   :  { %519 = vsyncpa [#allocation3], 1 }
 0x311   :  { %521 = vsyncpa [#allocation3 + $0x1], 1 }

</bundles_post_ra>
